<compile_context>
chip_gen: v6e
topology: v6e:2x2x1
jax: 0.10.0
libtpu: 0.0.40
codegen_flags: <defaults>
</compile_context>

<pallas_src>
import functools

import jax
import jax.numpy as jnp
from jax.experimental import pallas as pl
from jax.experimental.pallas import tpu as pltpu

LANE = 128
B_TILE = 128


def _round_up(n, m):
    return ((n + m - 1) // m) * m


def _pad2d(a, rows, cols):
    r, c = a.shape
    return jnp.pad(a, ((0, rows - r), (0, cols - c)))


# ---------------------------------------------------------------------------
# Phase A: coef = mean_over_batch(relu(relu(x@W1+b1)@W2+b2) @ W3 + b3)
# Grid iterates over batch tiles ("arbitrary"); the (1, C) output block stays
# resident across the grid and is used as the accumulator (init/finalize via
# pl.when).
# ---------------------------------------------------------------------------
def _coef_kernel(x_ref, w1_ref, b1_ref, w2_ref, b2_ref, w3_ref, b3_ref,
                 coef_ref, *, true_b, b_tile):
    i = pl.program_id(0)

    @pl.when(i == 0)
    def _init():
        coef_ref[...] = jnp.zeros_like(coef_ref)

    # bf16 MXU operands, f32 accumulation; bias add / ReLU in f32.
    xb = x_ref[...].astype(jnp.bfloat16)
    h1 = jnp.dot(xb, w1_ref[...], preferred_element_type=jnp.float32) + b1_ref[...]
    h1 = jnp.maximum(h1, 0.0)
    h2 = jnp.dot(h1.astype(jnp.bfloat16), w2_ref[...],
                 preferred_element_type=jnp.float32) + b2_ref[...]
    h2 = jnp.maximum(h2, 0.0)
    c = jnp.dot(h2.astype(jnp.bfloat16), w3_ref[...],
                preferred_element_type=jnp.float32) + b3_ref[...]      # (b_tile, C)

    # Mask padded batch rows and reduce over rows on the MXU:
    # (1, b_tile) 0/1 mask  @  (b_tile, C)  ->  (1, C) masked row-sum.
    row_ids = i * b_tile + jax.lax.broadcasted_iota(jnp.int32, (1, b_tile), 1)
    valid = (row_ids < true_b).astype(jnp.float32)
    coef_ref[...] += jnp.dot(valid, c, preferred_element_type=jnp.float32)

    @pl.when(i == pl.num_programs(0) - 1)
    def _finalize():
        coef_ref[...] = coef_ref[...] * (1.0 / float(true_b))


# ---------------------------------------------------------------------------
# Phase B: y = sigmoid(x @ coef), emitted lane-dense as a (1, B_pad) slab.
# Batch tiles are independent -> "parallel" (megacore-shardable on v7x).
# ---------------------------------------------------------------------------
def _predict_kernel(x_ref, coef_ref, o_ref):
    # (1, D) and (b_tile, D) contracted over D -> (1, b_tile): batch lands on
    # the lane axis and the reduction runs on the MXU instead of the XLU.
    logits = jax.lax.dot_general(
        coef_ref[...], x_ref[...],
        dimension_numbers=(((1,), (1,)), ((), ())),
        preferred_element_type=jnp.float32)
    o_ref[...] = jax.nn.sigmoid(logits)


def mlp_lr_forward(x, w1, b1, w2, b2, w3, b3):
    """x: (B, input_size) f32. Weights pre-transposed: w* is (in, out), b* is (1, out)."""
    B, D = x.shape
    H = w1.shape[1]
    C = w3.shape[1]
    assert C == D, "module requires num_classes == input_size for matmul(x, coef)"

    d_pad = _round_up(D, LANE)
    h_pad = _round_up(H, LANE)
    c_pad = d_pad
    b_pad = _round_up(B, B_TILE)
    n_tiles = b_pad // B_TILE

    # Lane-dense, zero-padded operands; weights in bf16, biases stay f32.
    x_p = _pad2d(x.astype(jnp.float32), b_pad, d_pad)
    w1_p = _pad2d(w1, d_pad, h_pad).astype(jnp.bfloat16)
    b1_p = _pad2d(b1, 1, h_pad).astype(jnp.float32)
    w2_p = _pad2d(w2, h_pad, h_pad).astype(jnp.bfloat16)
    b2_p = _pad2d(b2, 1, h_pad).astype(jnp.float32)
    w3_p = _pad2d(w3, h_pad, c_pad).astype(jnp.bfloat16)
    b3_p = _pad2d(b3, 1, c_pad).astype(jnp.float32)

    # ---- Phase A: batch-mean coefficient -----------------------------------
    coef = pl.pallas_call(
        functools.partial(_coef_kernel, true_b=B, b_tile=B_TILE),
        out_shape=jax.ShapeDtypeStruct((1, c_pad), jnp.float32),
        grid_spec=pltpu.PrefetchScalarGridSpec(
            num_scalar_prefetch=0,
            grid=(n_tiles,),
            in_specs=[
                pl.BlockSpec((B_TILE, d_pad), lambda i: (i, 0)),   # x batch tile
                pl.BlockSpec((d_pad, h_pad), lambda i: (0, 0)),    # W1 (resident)
                pl.BlockSpec((1, h_pad), lambda i: (0, 0)),        # b1
                pl.BlockSpec((h_pad, h_pad), lambda i: (0, 0)),    # W2
                pl.BlockSpec((1, h_pad), lambda i: (0, 0)),        # b2
                pl.BlockSpec((h_pad, c_pad), lambda i: (0, 0)),    # W3
                pl.BlockSpec((1, c_pad), lambda i: (0, 0)),        # b3
            ],
            out_specs=pl.BlockSpec((1, c_pad), lambda i: (0, 0)),  # accumulator
        ),
        compiler_params=pltpu.CompilerParams(
            dimension_semantics=("arbitrary",)),
    )(x_p, w1_p, b1_p, w2_p, b2_p, w3_p, b3_p)

    # ---- Phase B: y = sigmoid(x @ coef), lane-dense (1, b_pad) output -------
    y = pl.pallas_call(
        _predict_kernel,
        out_shape=jax.ShapeDtypeStruct((1, b_pad), jnp.float32),
        grid_spec=pltpu.PrefetchScalarGridSpec(
            num_scalar_prefetch=0,
            grid=(n_tiles,),
            in_specs=[
                pl.BlockSpec((B_TILE, d_pad), lambda i: (i, 0)),   # x batch tile
                pl.BlockSpec((1, d_pad), lambda i: (0, 0)),        # coef (resident)
            ],
            out_specs=pl.BlockSpec((1, B_TILE), lambda i: (0, i)),
        ),
        compiler_params=pltpu.CompilerParams(
            dimension_semantics=("parallel",)),
    )(x_p, coef)

    return y[0, :B]


def init_params(key, input_size, hidden_size, num_classes):
    """Deterministic synthetic params (uniform, roughly matching nn.Linear scale)."""
    ks = jax.random.split(key, 6)

    def lin(kw, kb, fan_in, fan_out):
        bound = 1.0 / jnp.sqrt(fan_in)
        w = jax.random.uniform(kw, (fan_in, fan_out), jnp.float32, -bound, bound)
        b = jax.random.uniform(kb, (1, fan_out), jnp.float32, -bound, bound)
        return w, b

    w1, b1 = lin(ks[0], ks[1], input_size, hidden_size)
    w2, b2 = lin(ks[2], ks[3], hidden_size, hidden_size)
    w3, b3 = lin(ks[4], ks[5], hidden_size, num_classes)
    return w1, b1, w2, b2, w3, b3


if __name__ == "__main__":
    input_size = 11
    hidden_size = 100
    num_classes = 11

    key = jax.random.PRNGKey(0)
    k_p, k_x1, k_x2 = jax.random.split(key, 3)
    params = init_params(k_p, input_size, hidden_size, num_classes)
    w1, b1, w2, b2, w3, b3 = params

    # batch=8 (single tile) and batch=200 (multi-tile, exercises the masked
    # batch-mean accumulation across grid steps).
    for batch, kx in ((8, k_x1), (200, k_x2)):
        x = jax.random.normal(kx, (batch, input_size), dtype=jnp.float32)
        y = mlp_lr_forward(x, *params)
        jax.block_until_ready(y)
        assert y.shape == (batch,)

        # Reference mirroring the kernel numerics (bf16 operands, f32 accumulate).
        bf = jnp.bfloat16
        h1 = jnp.maximum(jnp.dot(x.astype(bf), w1.astype(bf),
                                 preferred_element_type=jnp.float32) + b1, 0.0)
        h2 = jnp.maximum(jnp.dot(h1.astype(bf), w2.astype(bf),
                                 preferred_element_type=jnp.float32) + b2, 0.0)
        coef = jnp.mean(jnp.dot(h2.astype(bf), w3.astype(bf),
                                preferred_element_type=jnp.float32) + b3, axis=0)
        y_bf16_ref = jax.nn.sigmoid(x @ coef)
        assert jnp.allclose(y, y_bf16_ref, atol=1e-3, rtol=1e-3), \
            float(jnp.max(jnp.abs(y - y_bf16_ref)))

        # Pure-f32 reference of the original module (loose tol for bf16 operands).
        h1f = jnp.maximum(x @ w1 + b1, 0.0)
        h2f = jnp.maximum(h1f @ w2 + b2, 0.0)
        coef_f = jnp.mean(h2f @ w3 + b3, axis=0)
        y_f32_ref = jax.nn.sigmoid(x @ coef_f)
        assert jnp.allclose(y, y_f32_ref, atol=2e-2, rtol=2e-2), \
            float(jnp.max(jnp.abs(y - y_f32_ref)))

    print("KERNEL_OK")
</pallas_src>

<mosaic_0001>
module attributes {stable_mosaic.version = 11 : i64} {
  func.func @_coef_kernel(%arg0: i32, %arg1: memref<128x128xf32, #tpu.memory_space<vmem>>, %arg2: memref<128x128xbf16, #tpu.memory_space<vmem>>, %arg3: memref<1x128xf32, #tpu.memory_space<vmem>>, %arg4: memref<128x128xbf16, #tpu.memory_space<vmem>>, %arg5: memref<1x128xf32, #tpu.memory_space<vmem>>, %arg6: memref<128x128xbf16, #tpu.memory_space<vmem>>, %arg7: memref<1x128xf32, #tpu.memory_space<vmem>>, %arg8: memref<1x128xf32, #tpu.memory_space<vmem>>) attributes {dimension_semantics = [#tpu.dimension_semantics<arbitrary>], iteration_bounds = array<i64: 1>, scalar_prefetch = 0 : i64, scratch_operands = 0 : i64, tpu.core_type = #tpu.core_type<tc>, window_params = [{transform_indices = @transform_0, window_bounds = array<i64: 128, 128>}, {pipeline_mode = #tpu.pipeline_mode<synchronous>, transform_indices = @transform_1, window_bounds = array<i64: 128, 128>}, {pipeline_mode = #tpu.pipeline_mode<synchronous>, transform_indices = @transform_2, window_bounds = array<i64: 1, 128>}, {pipeline_mode = #tpu.pipeline_mode<synchronous>, transform_indices = @transform_3, window_bounds = array<i64: 128, 128>}, {pipeline_mode = #tpu.pipeline_mode<synchronous>, transform_indices = @transform_4, window_bounds = array<i64: 1, 128>}, {pipeline_mode = #tpu.pipeline_mode<synchronous>, transform_indices = @transform_5, window_bounds = array<i64: 128, 128>}, {pipeline_mode = #tpu.pipeline_mode<synchronous>, transform_indices = @transform_6, window_bounds = array<i64: 1, 128>}, {pipeline_mode = #tpu.pipeline_mode<synchronous>, transform_indices = @transform_7, window_bounds = array<i64: 1, 128>}]} {
    %c0_i32 = arith.constant 0 : i32
    %0 = arith.cmpi eq, %arg0, %c0_i32 : i32
    %1 = arith.extui %0 : i1 to i32
    %c0_i32_0 = arith.constant 0 : i32
    %2 = arith.cmpi ne, %1, %c0_i32_0 : i32
    scf.if %2 {
      %cst_25 = arith.constant 0.000000e+00 : f32
      %41 = vector.broadcast %cst_25 : f32 to vector<1x128xf32>
      %c0_26 = arith.constant 0 : index
      %c0_27 = arith.constant 0 : index
      %42 = vector.load %arg8[%c0_26, %c0_27] : memref<1x128xf32, #tpu.memory_space<vmem>>, vector<1x128xf32>
      tpu.vector_store %arg8[%c0_26, %c0_27], %41 {strides = array<i32>} : memref<1x128xf32, #tpu.memory_space<vmem>>, vector<1x128xf32>,
    } else {
    }
    %c0 = arith.constant 0 : index
    %c0_1 = arith.constant 0 : index
    %3 = vector.load %arg1[%c0, %c0_1] : memref<128x128xf32, #tpu.memory_space<vmem>>, vector<128x128xf32>
    %4 = arith.truncf %3 : vector<128x128xf32> to vector<128x128xbf16>
    %c0_2 = arith.constant 0 : index
    %c0_3 = arith.constant 0 : index
    %5 = vector.load %arg2[%c0_2, %c0_3] : memref<128x128xbf16, #tpu.memory_space<vmem>>, vector<128x128xbf16>
    %cst = arith.constant dense<0.000000e+00> : vector<128x128xf32>
    %6 = tpu.matmul %4, %5, %cst {dimension_numbers = #tpu.dot_dimension_numbers<[1], [0], [0], [1], [0, 0, 1, 1], [], []>} : vector<128x128xbf16>, vector<128x128xbf16>, vector<128x128xf32> -> vector<128x128xf32>
    %c0_4 = arith.constant 0 : index
    %c0_5 = arith.constant 0 : index
    %7 = vector.load %arg3[%c0_4, %c0_5] : memref<1x128xf32, #tpu.memory_space<vmem>>, vector<1x128xf32>
    %8 = vector.broadcast %7 : vector<1x128xf32> to vector<128x128xf32>
    %9 = arith.addf %6, %8 : vector<128x128xf32>
    %cst_6 = arith.constant 0.000000e+00 : f32
    %10 = vector.broadcast %cst_6 : f32 to vector<128x128xf32>
    %11 = arith.maximumf %9, %10 : vector<128x128xf32>
    %12 = arith.truncf %11 : vector<128x128xf32> to vector<128x128xbf16>
    %c0_7 = arith.constant 0 : index
    %c0_8 = arith.constant 0 : index
    %13 = vector.load %arg4[%c0_7, %c0_8] : memref<128x128xbf16, #tpu.memory_space<vmem>>, vector<128x128xbf16>
    %cst_9 = arith.constant dense<0.000000e+00> : vector<128x128xf32>
    %14 = tpu.matmul %12, %13, %cst_9 {dimension_numbers = #tpu.dot_dimension_numbers<[1], [0], [0], [1], [0, 0, 1, 1], [], []>} : vector<128x128xbf16>, vector<128x128xbf16>, vector<128x128xf32> -> vector<128x128xf32>
    %c0_10 = arith.constant 0 : index
    %c0_11 = arith.constant 0 : index
    %15 = vector.load %arg5[%c0_10, %c0_11] : memref<1x128xf32, #tpu.memory_space<vmem>>, vector<1x128xf32>
    %16 = vector.broadcast %15 : vector<1x128xf32> to vector<128x128xf32>
    %17 = arith.addf %14, %16 : vector<128x128xf32>
    %cst_12 = arith.constant 0.000000e+00 : f32
    %18 = vector.broadcast %cst_12 : f32 to vector<128x128xf32>
    %19 = arith.maximumf %17, %18 : vector<128x128xf32>
    %20 = arith.truncf %19 : vector<128x128xf32> to vector<128x128xbf16>
    %c0_13 = arith.constant 0 : index
    %c0_14 = arith.constant 0 : index
    %21 = vector.load %arg6[%c0_13, %c0_14] : memref<128x128xbf16, #tpu.memory_space<vmem>>, vector<128x128xbf16>
    %cst_15 = arith.constant dense<0.000000e+00> : vector<128x128xf32>
    %22 = tpu.matmul %20, %21, %cst_15 {dimension_numbers = #tpu.dot_dimension_numbers<[1], [0], [0], [1], [0, 0, 1, 1], [], []>} : vector<128x128xbf16>, vector<128x128xbf16>, vector<128x128xf32> -> vector<128x128xf32>
    %c0_16 = arith.constant 0 : index
    %c0_17 = arith.constant 0 : index
    %23 = vector.load %arg7[%c0_16, %c0_17] : memref<1x128xf32, #tpu.memory_space<vmem>>, vector<1x128xf32>
    %24 = vector.broadcast %23 : vector<1x128xf32> to vector<128x128xf32>
    %25 = arith.addf %22, %24 : vector<128x128xf32>
    %c128_i32 = arith.constant 128 : i32
    %26 = arith.muli %arg0, %c128_i32 : i32
    %27 = tpu.iota {dimensions = array<i32: 1>} : vector<1x128xi32>
    %28 = vector.broadcast %26 : i32 to vector<1x128xi32>
    %29 = arith.addi %28, %27 : vector<1x128xi32>
    %c8_i32 = arith.constant 8 : i32
    %30 = vector.broadcast %c8_i32 : i32 to vector<1x128xi32>
    %31 = arith.cmpi slt, %29, %30 : vector<1x128xi32>
    %32 = arith.extui %31 : vector<1x128xi1> to vector<1x128xi32>
    %33 = arith.sitofp %32 : vector<1x128xi32> to vector<1x128xf32>
    %c0_18 = arith.constant 0 : index
    %c0_19 = arith.constant 0 : index
    %34 = vector.load %arg8[%c0_18, %c0_19] : memref<1x128xf32, #tpu.memory_space<vmem>>, vector<1x128xf32>
    %cst_20 = arith.constant dense<0.000000e+00> : vector<1x128xf32>
    %35 = tpu.matmul %33, %25, %cst_20 {dimension_numbers = #tpu.dot_dimension_numbers<[1], [0], [0], [1], [0, 0, 1, 1], [], []>} : vector<1x128xf32>, vector<128x128xf32>, vector<1x128xf32> -> vector<1x128xf32>
    %36 = arith.addf %34, %35 : vector<1x128xf32>
    %c0_21 = arith.constant 0 : index
    %c0_22 = arith.constant 0 : index
    %37 = vector.load %arg8[%c0_21, %c0_22] : memref<1x128xf32, #tpu.memory_space<vmem>>, vector<1x128xf32>
    tpu.vector_store %arg8[%c0_21, %c0_22], %36 {strides = array<i32>} : memref<1x128xf32, #tpu.memory_space<vmem>>, vector<1x128xf32>,
    %c0_i32_23 = arith.constant 0 : i32
    %38 = arith.cmpi eq, %arg0, %c0_i32_23 : i32
    %39 = arith.extui %38 : i1 to i32
    %c0_i32_24 = arith.constant 0 : i32
    %40 = arith.cmpi ne, %39, %c0_i32_24 : i32
    scf.if %40 {
      %c0_25 = arith.constant 0 : index
      %c0_26 = arith.constant 0 : index
      %41 = vector.load %arg8[%c0_25, %c0_26] : memref<1x128xf32, #tpu.memory_space<vmem>>, vector<1x128xf32>
      %cst_27 = arith.constant 1.250000e-01 : f32
      %42 = vector.broadcast %cst_27 : f32 to vector<1x128xf32>
      %43 = arith.mulf %41, %42 : vector<1x128xf32>
      %c0_28 = arith.constant 0 : index
      %c0_29 = arith.constant 0 : index
      %44 = vector.load %arg8[%c0_28, %c0_29] : memref<1x128xf32, #tpu.memory_space<vmem>>, vector<1x128xf32>
      tpu.vector_store %arg8[%c0_28, %c0_29], %43 {strides = array<i32>} : memref<1x128xf32, #tpu.memory_space<vmem>>, vector<1x128xf32>,
    } else {
    }
    return
  }
  func.func @transform_0(%arg0: i32) -> (i32, i32) {
    %c0_i32 = arith.constant 0 : i32
    %c0_i32_0 = arith.constant 0 : i32
    return %arg0, %c0_i32 : i32, i32
  }
  func.func @transform_1(%arg0: i32) -> (i32, i32) {
    %c0_i32 = arith.constant 0 : i32
    %c0_i32_0 = arith.constant 0 : i32
    %c0_i32_1 = arith.constant 0 : i32
    return %c0_i32, %c0_i32_0 : i32, i32
  }
  func.func @transform_2(%arg0: i32) -> (i32, i32) {
    %c0_i32 = arith.constant 0 : i32
    %c0_i32_0 = arith.constant 0 : i32
    %c0_i32_1 = arith.constant 0 : i32
    return %c0_i32, %c0_i32_0 : i32, i32
  }
  func.func @transform_3(%arg0: i32) -> (i32, i32) {
    %c0_i32 = arith.constant 0 : i32
    %c0_i32_0 = arith.constant 0 : i32
    %c0_i32_1 = arith.constant 0 : i32
    return %c0_i32, %c0_i32_0 : i32, i32
  }
  func.func @transform_4(%arg0: i32) -> (i32, i32) {
    %c0_i32 = arith.constant 0 : i32
    %c0_i32_0 = arith.constant 0 : i32
    %c0_i32_1 = arith.constant 0 : i32
    return %c0_i32, %c0_i32_0 : i32, i32
  }
  func.func @transform_5(%arg0: i32) -> (i32, i32) {
    %c0_i32 = arith.constant 0 : i32
    %c0_i32_0 = arith.constant 0 : i32
    %c0_i32_1 = arith.constant 0 : i32
    return %c0_i32, %c0_i32_0 : i32, i32
  }
  func.func @transform_6(%arg0: i32) -> (i32, i32) {
    %c0_i32 = arith.constant 0 : i32
    %c0_i32_0 = arith.constant 0 : i32
    %c0_i32_1 = arith.constant 0 : i32
    return %c0_i32, %c0_i32_0 : i32, i32
  }
  func.func @transform_7(%arg0: i32) -> (i32, i32) {
    %c0_i32 = arith.constant 0 : i32
    %c0_i32_0 = arith.constant 0 : i32
    %c0_i32_1 = arith.constant 0 : i32
    return %c0_i32, %c0_i32_0 : i32, i32
  }
}

</mosaic_0001>

<bundles_post_ra>
// kernel: tpu_custom_call.1
= control target key start
LH: loop header
LB: loop body
LE: loop exit
PB: predicated region body
PF: predicated region fallthrough
CT: control target
= control target key end

     0   :  { %12 = vsyncpa [#allocation3], 0  ;;  %s1240_s0 = inlined_call_operand.hbm [shape: f32[128,128], index: 0, kind: input, shape index: {}]   ;;  %s1241_s1 = inlined_call_operand.hbm [shape: bf16[128,128], index: 1, kind: input, shape index: {}]   ;;  %s1242_s2 = inlined_call_operand.vmem [shape: f32[1,128], index: 2, kind: input, shape index: {}]   ;;  %s1243_s3 = inlined_call_operand.hbm [shape: bf16[128,128], index: 3, kind: input, shape index: {}]   ;;  %s1244_s4 = inlined_call_operand.vmem [shape: f32[1,128], index: 4, kind: input, shape index: {}]   ;;  %s1245_s5 = inlined_call_operand.hbm [shape: bf16[128,128], index: 5, kind: input, shape index: {}]   ;;  %s1246_s6 = inlined_call_operand.vmem [shape: f32[1,128], index: 6, kind: input, shape index: {}]   ;;  %s1247_s7 = inlined_call_operand.hbm [shape: f32[1,128], index: 7, kind: output, shape index: {}]  }
   0x1   :  { %13 = vsyncpa [#allocation6], 0 }
   0x2   :  { %14 = vsyncpa [#allocation9], 0 }
   0x3   :  { %15 = vsyncpa [#allocation4], 0  ;;  %s1137_s24 = smov [#allocation5]  }
   0x4   :  { %s33_s25 = sshll.u32 %s1137_s24, 4  ;;  %s34_s25 = int_to_ptr.vmem [resolvable:$true] %s33_s25 }
   0x5   :  { %s1037_s26 = scalar_lea.vmem %s34_s25, 1024  ;;  %p1042_p1 = scmp.lt.s32.totalorder %s34_s25, %s34_s25 }
   0x6   :  { %p1038_p0 = scmp.ne.s32.totalorder %s34_s25, %s1037_s26  ;;  %p1043_p2 = scmp.lt.s32.totalorder %s1037_s26, %s1037_s26 }
   0x8   :  { %p1044_p3 = por %p1043_p2, %p1042_p1 }
   0xa   :  { %p1045_p4 = pnand %p1044_p3, %p1038_p0 }
   0xc   :  { %1048 = shalt.err (!%p1045_p4)
}
   0xd   :  { %s1138_s27 = smov 64   ;;  %s1139_s28 = smov 4  }
   0xe   :  { %39 = dma.hbm_to_vmem [thread:$0]  %s1241_s1, 1024, %s34_s25, [#allocation6], %s1138_s27, %s1138_s27, %s1139_s28  }
   0xf   :  { %s1140_s8 = smov [#allocation2]  }
  0x10   :  { %s21_s9 = sshll.u32 %s1140_s8, 4  ;;  %s22_s9 = int_to_ptr.vmem [resolvable:$true] %s21_s9 }
  0x11   :  { %s1057_s10 = scalar_lea.vmem %s22_s9, 2048  ;;  %p1062_p6 = scmp.lt.s32.totalorder %s22_s9, %s22_s9 }
  0x12   :  { %p1058_p5 = scmp.ne.s32.totalorder %s22_s9, %s1057_s10  ;;  %p1063_p7 = scmp.lt.s32.totalorder %s1057_s10, %s1057_s10 }
  0x14   :  { %p1064_p8 = por %p1063_p7, %p1062_p6 }
  0x16   :  { %p1065_p9 = pnand %p1064_p8, %p1058_p5 }
  0x18   :  { %1068 = shalt.err (!%p1065_p9)
}
  0x19   :  { %s1141_s11 = smov 128   ;;  %s1142_s12 = smov 8  }
  0x1a   :  { %27 = dma.hbm_to_vmem [thread:$0]  %s1240_s0, 2048, %s22_s9, [#allocation3], %s1141_s11, %s1141_s11, %s1142_s12  }
  0x1b   :  { %s1143_s15 = smov [#allocation7]   ;;  %s1144_s17 = smov [#allocation8]  }
  0x1c   :  { %s47_s16 = sshll.u32 %s1143_s15, 4  ;;  %s61_s1 = sshll.u32 %s1144_s17, 4  ;;  %s48_s16 = int_to_ptr.vmem [resolvable:$true] %s47_s16  ;;  %s62_s1 = int_to_ptr.vmem [resolvable:$true] %s61_s1 }
  0x1d   :  { %s1077_s18 = scalar_lea.vmem %s48_s16, 1024  ;;  %p1082_p11 = scmp.lt.s32.totalorder %s48_s16, %s48_s16 }
  0x1e   :  { %p1078_p10 = scmp.ne.s32.totalorder %s48_s16, %s1077_s18  ;;  %p1083_p12 = scmp.lt.s32.totalorder %s1077_s18, %s1077_s18 }
  0x20   :  { %p1084_p13 = por %p1083_p12, %p1082_p11 }
  0x22   :  { %p1085_p0 = pnand %p1084_p13, %p1078_p10 }
  0x24   :  { %1088 = shalt.err (!%p1085_p0)
}
  0x25   :  { %53 = dma.hbm_to_vmem [thread:$0]  %s1243_s3, 1024, %s48_s16, [#allocation6], %s1138_s27, %s1138_s27, %s1139_s28  }
  0x26   :  { %s1097_s0 = scalar_lea.vmem %s62_s1, 1024  ;;  %p1102_p2 = scmp.lt.s32.totalorder %s62_s1, %s62_s1 }
  0x27   :  { %p1098_p1 = scmp.ne.s32.totalorder %s62_s1, %s1097_s0  ;;  %p1103_p3 = scmp.lt.s32.totalorder %s1097_s0, %s1097_s0 }
  0x29   :  { %p1104_p4 = por %p1103_p3, %p1102_p2 }
  0x2b   :  { %p1105_p5 = pnand %p1104_p4, %p1098_p1 }
  0x2d   :  { %1108 = shalt.err (!%p1105_p5)
}
  0x2e   :  { %67 = dma.hbm_to_vmem [thread:$0]  %s1245_s5, 1024, %s62_s1, [#allocation9], %s1138_s27, %s1138_s27, %s1139_s28  }
  0x2f   :  { %1129 = dma.done.wait [#allocation3], 2048  }
  0x30   :  { %1130 = vsyncadd [#allocation3], 4294965248 }
  0x31   :  { %1131 = dma.done.wait [#allocation6], 2048  }
  0x32   :  { %1132 = vsyncadd [#allocation6], 4294965248 }
  0x33   :  { %1133 = dma.done.wait [#allocation9], 1024  }
  0x34   :  { %1134 = vsyncadd [#allocation9], 4294966272  ;;  %v1005_v0 = vld [vmem:[#allocation5 + $0x38] sm:$0xff]   ;;  %v1006_v1 = vld [vmem:[#allocation5 + $0x30] sm:$0xff]   ;;  %vm1146_vm0 = vmmov 0  }
  0x35   :  { %862 = vmatprep.subr.bf16.mxu0 %v1005_v0  ;;  %v1007_v2 = vld [vmem:[#allocation5 + $0x28] sm:$0xff]   ;;  %v1008_v3 = vld [vmem:[#allocation5 + $0x20] sm:$0xff]   ;;  %v1009_v7 = vld [vmem:[#allocation5 + $0x18] sm:$0xff]  }
  0x36   :  { %863 = vmatpush3.bf16.msra.mxu0 %v1005_v0  ;;  %v88_v4 = vld [vmem:[#allocation2] sm:$0xff]  ;;  %v89_v5 = vld [vmem:[#allocation2 + $0x8] sm:$0xff]  ;;  %v1013_v8 = vld [vmem:[#allocation7 + $0x38] sm:$0xff]  }
  0x37   :  { %864 = vmatprep.subr.bf16.mxu0 %v1006_v1  ;;  %v104_v6 = vpack.c.bf16 %v89_v5, %v88_v4  ;;  %v1014_v9 = vld [vmem:[#allocation7 + $0x30] sm:$0xff]   ;;  %894 = vmatprep.subr.bf16.mxu1 %v1013_v8  ;;  %v1011_v11 = vld [vmem:[#allocation5 + $0x8] sm:$0xff]   ;;  %v1016_v13 = vld [vmem:[#allocation7 + $0x20] sm:$0xff]  }
  0x38   :  { %v1010_v10 = vld [vmem:[#allocation5 + $0x10] sm:$0xff]   ;;  %895 = vmatpush3.bf16.msra.mxu1 %v1013_v8  ;;  %v1015_v12 = vld [vmem:[#allocation7 + $0x28] sm:$0xff]   ;;  %v1012_v14 = vld [vmem:[#allocation5] sm:$0xff]  }
  0x39   :  { %878 = vmatprep.mubr.bf16.mxu0 %v104_v6  ;;  %896 = vmatprep.subr.bf16.mxu1 %v1014_v9  ;;  %v1017_v15 = vld [vmem:[#allocation7 + $0x18] sm:$0xff]   ;;  %v90_v16 = vld [vmem:[#allocation2 + $0x10] sm:$0xff]  ;;  %v92_v18 = vld [vmem:[#allocation2 + $0x20] sm:$0xff] }
  0x3a   :  { %865 = vmatpush3.bf16.msra.mxu0 %v1006_v1  ;;  %v91_v17 = vld [vmem:[#allocation2 + $0x18] sm:$0xff]  ;;  %v93_v19 = vld [vmem:[#allocation2 + $0x28] sm:$0xff]  ;;  %v94_v22 = vld [vmem:[#allocation2 + $0x30] sm:$0xff] }
  0x3b   :  { %866 = vmatprep.subr.bf16.mxu0 %v1007_v2  ;;  %v105_v20 = vpack.c.bf16 %v91_v17, %v90_v16  ;;  %v106_v21 = vpack.c.bf16 %v93_v19, %v92_v18  ;;  %v95_v23 = vld [vmem:[#allocation2 + $0x38] sm:$0xff]  ;;  %v96_v24 = vld [vmem:[#allocation2 + $0x40] sm:$0xff]  ;;  %v97_v25 = vld [vmem:[#allocation2 + $0x48] sm:$0xff] }
  0x3c   :  { %897 = vmatpush3.bf16.msra.mxu1 %v1014_v9  ;;  %v107_v26 = vpack.c.bf16 %v95_v23, %v94_v22  ;;  %v108_v27 = vpack.c.bf16 %v97_v25, %v96_v24  ;;  %v98_v28 = vld [vmem:[#allocation2 + $0x50] sm:$0xff]  ;;  %v99_v29 = vld [vmem:[#allocation2 + $0x58] sm:$0xff]  ;;  %v100_v30 = vld [vmem:[#allocation2 + $0x60] sm:$0xff] }
  0x3d   :  { %898 = vmatprep.subr.bf16.mxu1 %v1015_v12  ;;  %v101_v31 = vld [vmem:[#allocation2 + $0x68] sm:$0xff]  ;;  %v109_v32 = vpack.c.bf16 %v99_v29, %v98_v28  ;;  %v102_v34 = vld [vmem:[#allocation2 + $0x70] sm:$0xff]  ;;  %v103_v35 = vld [vmem:[#allocation2 + $0x78] sm:$0xff] }
  0x3e   :  { %867 = vmatpush3.bf16.msra.mxu0 %v1007_v2  ;;  %v110_v33 = vpack.c.bf16 %v101_v31, %v100_v30  ;;  %v111_v36 = vpack.c.bf16 %v103_v35, %v102_v34  ;;  %v1018_v37 = vld [vmem:[#allocation7 + $0x10] sm:$0xff]   ;;  %v1019_v38 = vld [vmem:[#allocation7 + $0x8] sm:$0xff]   ;;  %v1020_v39 = vld [vmem:[#allocation7] sm:$0xff]  }
  0x3f   :  { %868 = vmatprep.subr.bf16.mxu0 %v1008_v3  ;;  %v1021_v40 = vld [vmem:[#allocation8 + $0x38] sm:$0xff]   ;;  %v1022_v41 = vld [vmem:[#allocation8 + $0x30] sm:$0xff]   ;;  %v1023_v42 = vld [vmem:[#allocation8 + $0x28] sm:$0xff]  }
  0x40   :  { %899 = vmatpush3.bf16.msra.mxu1 %v1015_v12  ;;  %v1024_v43 = vld [vmem:[#allocation8 + $0x20] sm:$0xff]   ;;  %v1025_v44 = vld [vmem:[#allocation8 + $0x18] sm:$0xff]  }
  0x41   :  { %900 = vmatprep.subr.bf16.mxu1 %v1016_v13  ;;  %v768_v47 = vld [vmem:[%s1242_s2] ss:$0 sm:$0xff] }
  0x42   :  { %869 = vmatpush3.bf16.msra.mxu0 %v1008_v3 }
  0x43   :  { %870 = vmatprep.subr.bf16.mxu0 %v1009_v7 }
  0x44   :  { %901 = vmatpush3.bf16.msra.mxu1 %v1016_v13 }
  0x45   :  { %902 = vmatprep.subr.bf16.mxu1 %v1017_v15 }
  0x46   :  { %871 = vmatpush3.bf16.msra.mxu0 %v1009_v7 }
  0x47   :  { %872 = vmatprep.subr.bf16.mxu0 %v1010_v10 }
  0x48   :  { %903 = vmatpush3.bf16.msra.mxu1 %v1017_v15 }
  0x49   :  { %904 = vmatprep.subr.bf16.mxu1 %v1018_v37 }
  0x4a   :  { %873 = vmatpush3.bf16.msra.mxu0 %v1010_v10 }
  0x4b   :  { %874 = vmatprep.subr.bf16.mxu0 %v1011_v11 }
  0x4c   :  { %905 = vmatpush3.bf16.msra.mxu1 %v1018_v37 }
  0x4d   :  { %906 = vmatprep.subr.bf16.mxu1 %v1019_v38 }
  0x4e   :  { %875 = vmatpush3.bf16.msra.mxu0 %v1011_v11 }
  0x4f   :  { %876 = vmatprep.subr.bf16.mxu0 %v1012_v14 }
  0x50   :  { %907 = vmatpush3.bf16.msra.mxu1 %v1019_v38  ;;  %v1026_v38 = vld [vmem:[#allocation8 + $0x10] sm:$0xff]  }
  0x51   :  { %908 = vmatprep.subr.bf16.mxu1 %v1020_v39 }
  0x52   :  { %877 = vmatpush3.bf16.msra.mxu0 %v1012_v14 }
  0x53   :  { %926 = vmatprep.subr.bf16.mxu0 %v1021_v40 }
  0x54   :  { %909 = vmatpush3.bf16.msra.mxu1 %v1020_v39  ;;  %v1027_v39 = vld [vmem:[#allocation8 + $0x8] sm:$0xff]  }
  0x55   :  { %879 = vmatmul.mubr.bf16.vlgmr.msra.gmra.mxu0 %v105_v20 }
  0x56   :  { %882 = vmatprep.mubr.bf16.mxu0 %v106_v21  ;;  %927 = vmatpush3.bf16.msra.mxu0 %v1021_v40  ;;  %v1028_v40 = vld [vmem:[#allocation8] sm:$0xff]  }
  0x57   :  { %928 = vmatprep.subr.bf16.mxu0 %v1022_v41 }
  0x5a   :  { %929 = vmatpush3.bf16.msra.mxu0 %v1022_v41 }
  0x5b   :  { %930 = vmatprep.subr.bf16.mxu0 %v1023_v42 }
  0x5d   :  { %883 = vmatmul.mubr.bf16.gmra.mxu0 %v107_v26 }
  0x5e   :  { %886 = vmatprep.mubr.bf16.mxu0 %v108_v27  ;;  %931 = vmatpush3.bf16.msra.mxu0 %v1023_v42 }
  0x5f   :  { %932 = vmatprep.subr.bf16.mxu0 %v1024_v43 }
  0x62   :  { %933 = vmatpush3.bf16.msra.mxu0 %v1024_v43  ;;  %v777_v43 = vld [vmem:[%s1244_s4] ss:$0 sm:$0xff] }
  0x63   :  { %934 = vmatprep.subr.bf16.mxu0 %v1025_v44 }
  0x65   :  { %887 = vmatmul.mubr.bf16.gmra.mxu0 %v109_v32 }
  0x66   :  { %890 = vmatprep.mubr.bf16.mxu0 %v110_v33  ;;  %935 = vmatpush3.bf16.msra.mxu0 %v1025_v44 }
  0x67   :  { %936 = vmatprep.subr.bf16.mxu0 %v1026_v38 }
  0x6a   :  { %937 = vmatpush3.bf16.msra.mxu0 %v1026_v38 }
  0x6b   :  { %938 = vmatprep.subr.bf16.mxu0 %v1027_v39 }
  0x6d   :  { %891 = vmatmul.mubr.bf16.gmra.mxu0 %v111_v36 }
  0x6e   :  { %939 = vmatpush3.bf16.msra.mxu0 %v1027_v39 }
  0x6f   :  { %940 = vmatprep.subr.bf16.mxu0 %v1028_v40 }
  0x72   :  { %941 = vmatpush3.bf16.msra.mxu0 %v1028_v40 }
 0x115   :  { %v880_v45 = vpop.f32.mrf.mxu0 }
 0x116   :  { %v226_v51 = vadd.f32 %v880_v45, %v768_v47 }
 0x117   :  { %v217_v46 = vpop.f32.mrf.mxu0 }
 0x118   :  { %v218_v49 = vadd.f32 %v768_v47, %v217_v46  ;;  %v282_v58 = vmax.f32 %v226_v51, 0.0 }
 0x119   :  { %v881_v48 = vpop.f32.mrf.mxu0 }
 0x11a   :  { %v229_v50 = vadd.f32 %v881_v48, %v768_v47  ;;  %v280_v56 = vmax.f32 %v218_v49, 0.0 }
 0x11b   :  { %v220_v52 = vpop.f32.mrf.mxu0 }
 0x11c   :  { %v221_v53 = vadd.f32 %v768_v47, %v220_v52  ;;  %v283_v54 = vmax.f32 %v229_v50, 0.0 }
 0x11d   :  { %v884_v55 = vpop.f32.mrf.mxu0 }
 0x11e   :  { %v281_v57 = vmax.f32 %v221_v53, 0.0  ;;  %v297_v61 = vpack.c.bf16 %v283_v54, %v282_v58  ;;  %v242_v1 = vadd.f32 %v884_v55, %v768_v47 }
 0x11f   :  { %v233_v59 = vpop.f32.mrf.mxu0 }
 0x120   :  { %v296_v60 = vpack.c.bf16 %v281_v57, %v280_v56  ;;  %v234_v63 = vadd.f32 %v768_v47, %v233_v59  ;;  %v286_v8 = vmax.f32 %v242_v1, 0.0 }
 0x121   :  { %v885_v62 = vpop.f32.mrf.mxu0 }
 0x122   :  { %v245_v0 = vadd.f32 %v885_v62, %v768_v47  ;;  %910 = vmatprep.mubr.bf16.mxu1 %v296_v60  ;;  %v284_v6 = vmax.f32 %v234_v63, 0.0 }
 0x123   :  { %v236_v2 = vpop.f32.mrf.mxu0  ;;  %911 = vmatmul.mubr.bf16.vlgmr.msra.gmra.mxu1 %v297_v61 }
 0x124   :  { %v237_v3 = vadd.f32 %v768_v47, %v236_v2  ;;  %v287_v4 = vmax.f32 %v245_v0, 0.0 }
 0x125   :  { %v888_v5 = vpop.f32.mrf.mxu0 }
 0x126   :  { %v285_v7 = vmax.f32 %v237_v3, 0.0  ;;  %v299_v11 = vpack.c.bf16 %v287_v4, %v286_v8  ;;  %v258_v15 = vadd.f32 %v888_v5, %v768_v47 }
 0x127   :  { %v249_v9 = vpop.f32.mrf.mxu0 }
 0x128   :  { %v298_v10 = vpack.c.bf16 %v285_v7, %v284_v6  ;;  %v250_v13 = vadd.f32 %v768_v47, %v249_v9  ;;  %v290_v22 = vmax.f32 %v258_v15, 0.0 }
 0x129   :  { %v889_v12 = vpop.f32.mrf.mxu0 }
 0x12a   :  { %v261_v14 = vadd.f32 %v889_v12, %v768_v47  ;;  %914 = vmatprep.mubr.bf16.mxu1 %v298_v10  ;;  %v288_v20 = vmax.f32 %v250_v13, 0.0 }
 0x12b   :  { %v252_v16 = vpop.f32.mrf.mxu0  ;;  %915 = vmatmul.mubr.bf16.gmra.mxu1 %v299_v11 }
 0x12c   :  { %v253_v17 = vadd.f32 %v768_v47, %v252_v16  ;;  %v291_v18 = vmax.f32 %v261_v14, 0.0 }
 0x12d   :  { %v892_v19 = vpop.f32.mrf.mxu0 }
 0x12e   :  { %v289_v21 = vmax.f32 %v253_v17, 0.0  ;;  %v301_v25 = vpack.c.bf16 %v291_v18, %v290_v22  ;;  %v274_v29 = vadd.f32 %v892_v19, %v768_v47 }
 0x12f   :  { %v265_v23 = vpop.f32.mrf.mxu0 }
 0x130   :  { %v300_v24 = vpack.c.bf16 %v289_v21, %v288_v20  ;;  %v266_v27 = vadd.f32 %v768_v47, %v265_v23  ;;  %v294_v35 = vmax.f32 %v274_v29, 0.0 }
 0x131   :  { %v893_v26 = vpop.f32.mrf.mxu0 }
 0x132   :  { %v277_v28 = vadd.f32 %v893_v26, %v768_v47  ;;  %918 = vmatprep.mubr.bf16.mxu1 %v300_v24  ;;  %v292_v33 = vmax.f32 %v266_v27, 0.0 }
 0x133   :  { %v268_v30 = vpop.f32.mrf.mxu0  ;;  %919 = vmatmul.mubr.bf16.gmra.mxu1 %v301_v25 }
 0x134   :  { %v269_v31 = vadd.f32 %v768_v47, %v268_v30  ;;  %v295_v32 = vmax.f32 %v277_v28, 0.0 }
 0x136   :  { %v293_v34 = vmax.f32 %v269_v31, 0.0  ;;  %v303_v37 = vpack.c.bf16 %v295_v32, %v294_v35 }
 0x138   :  { %v302_v36 = vpack.c.bf16 %v293_v34, %v292_v33  ;;  %v1145_v34 = vmov 0.0  }
 0x139   :  { %958 = vmatprep.subr.mxu1 %v1145_v34  ;;  %87 = vst [vmem:[#allocation10] sm:$0x1] %v1145_v34 }
 0x13a   :  { %922 = vmatprep.mubr.bf16.mxu1 %v302_v36 }
 0x13b   :  { %923 = vmatmul.mubr.bf16.gmra.mxu1 %v303_v37 }
 0x13c   :  { %990 = vmatprep.mubr.msk.f32.mxu1 %vm1146_vm0, %v1145_v34 }
 0x1e3   :  { %v912_v41 = vpop.f32.mrf.mxu1 }
 0x1e4   :  { %v418_v47 = vadd.f32 %v912_v41, %v777_v43 }
 0x1e5   :  { %v409_v42 = vpop.f32.mrf.mxu1 }
 0x1e6   :  { %v410_v45 = vadd.f32 %v777_v43, %v409_v42  ;;  %v474_v54 = vmax.f32 %v418_v47, 0.0 }
 0x1e7   :  { %v913_v44 = vpop.f32.mrf.mxu1 }
 0x1e8   :  { %v421_v46 = vadd.f32 %v913_v44, %v777_v43  ;;  %v472_v52 = vmax.f32 %v410_v45, 0.0 }
 0x1e9   :  { %v412_v48 = vpop.f32.mrf.mxu1 }
 0x1ea   :  { %v413_v49 = vadd.f32 %v777_v43, %v412_v48  ;;  %v475_v50 = vmax.f32 %v421_v46, 0.0 }
 0x1eb   :  { %v916_v51 = vpop.f32.mrf.mxu1 }
 0x1ec   :  { %v473_v53 = vmax.f32 %v413_v49, 0.0  ;;  %v489_v57 = vpack.c.bf16 %v475_v50, %v474_v54  ;;  %v434_v61 = vadd.f32 %v916_v51, %v777_v43  ;;  %v786_v49 = vld [vmem:[%s1246_s6] ss:$0 sm:$0xff]  ;;  %s1148_s6 = smov [#allocation10]  }
 0x1ed   :  { %v425_v55 = vpop.f32.mrf.mxu1  ;;  %s757_s25 = sshll.u32 %s1148_s6, 4  ;;  %s758_s25 = int_to_ptr.vmem [resolvable:$true] %s757_s25 }
 0x1ee   :  { %v488_v56 = vpack.c.bf16 %v473_v53, %v472_v52  ;;  %v426_v59 = vadd.f32 %v777_v43, %v425_v55  ;;  %v478_v4 = vmax.f32 %v434_v61, 0.0  ;;  %s1109_s26 = scalar_lea.vmem %s758_s25, 16  ;;  %s1113_s27 = scalar_lea.vmem %s758_s25, 32 }
 0x1ef   :  { %v917_v58 = vpop.f32.mrf.mxu1  ;;  %p1110_p6 = scmp.ne.s32.totalorder %s758_s25, %s1109_s26  ;;  %p1114_p7 = scmp.lt.s32.totalorder %s758_s25, %s758_s25 }
 0x1f0   :  { %v437_v60 = vadd.f32 %v917_v58, %v777_v43  ;;  %942 = vmatprep.mubr.bf16.mxu0 %v488_v56  ;;  %v476_v2 = vmax.f32 %v426_v59, 0.0  ;;  %p1115_p8 = scmp.lt.s32.totalorder %s1113_s27, %s1109_s26 }
 0x1f1   :  { %v428_v62 = vpop.f32.mrf.mxu1  ;;  %943 = vmatmul.mubr.bf16.vlgmr.msra.gmra.mxu0 %v489_v57 }
 0x1f2   :  { %v429_v63 = vadd.f32 %v777_v43, %v428_v62  ;;  %v479_v0 = vmax.f32 %v437_v60, 0.0  ;;  %p1116_p9 = por %p1115_p8, %p1114_p7 }
 0x1f3   :  { %v920_v1 = vpop.f32.mrf.mxu1 }
 0x1f4   :  { %v477_v3 = vmax.f32 %v429_v63, 0.0  ;;  %v491_v7 = vpack.c.bf16 %v479_v0, %v478_v4  ;;  %v450_v11 = vadd.f32 %v920_v1, %v777_v43  ;;  %v665_v0 = vlaneseq  ;;  %p1117_p10 = pnand %p1116_p9, %p1110_p6 }
 0x1f5   :  { %v441_v5 = vpop.f32.mrf.mxu1 }
 0x1f6   :  { %v490_v6 = vpack.c.bf16 %v477_v3, %v476_v2  ;;  %v442_v9 = vadd.f32 %v777_v43, %v441_v5  ;;  %v482_v18 = vmax.f32 %v450_v11, 0.0  ;;  %v666_v3 = vand.u32 127, %v665_v0 }
 0x1f7   :  { %v921_v8 = vpop.f32.mrf.mxu1 }
 0x1f8   :  { %v453_v10 = vadd.f32 %v921_v8, %v777_v43  ;;  %946 = vmatprep.mubr.bf16.mxu0 %v490_v6  ;;  %v480_v16 = vmax.f32 %v442_v9, 0.0  ;;  %vm669_vm1 = vcmp.lt.s32.totalorder %v666_v3, 8  ;;  %v1147_v6 = vmov 1.0  }
 0x1f9   :  { %v444_v12 = vpop.f32.mrf.mxu1  ;;  %947 = vmatmul.mubr.bf16.gmra.mxu0 %v491_v7  ;;  %v672_v7 = vld [vmem:[#allocation10] sm:$0x1] }
 0x1fa   :  { %v445_v13 = vadd.f32 %v777_v43, %v444_v12  ;;  %v483_v14 = vmax.f32 %v453_v10, 0.0 }
 0x1fb   :  { %v924_v15 = vpop.f32.mrf.mxu1 }
 0x1fc   :  { %v481_v17 = vmax.f32 %v445_v13, 0.0  ;;  %v493_v21 = vpack.c.bf16 %v483_v14, %v482_v18  ;;  %v466_v25 = vadd.f32 %v924_v15, %v777_v43 }
 0x1fd   :  { %v457_v19 = vpop.f32.mrf.mxu1 }
 0x1fe   :  { %v492_v20 = vpack.c.bf16 %v481_v17, %v480_v16  ;;  %v458_v23 = vadd.f32 %v777_v43, %v457_v19  ;;  %v486_v31 = vmax.f32 %v466_v25, 0.0 }
 0x1ff   :  { %v925_v22 = vpop.f32.mrf.mxu1 }
 0x200   :  { %v469_v24 = vadd.f32 %v925_v22, %v777_v43  ;;  %950 = vmatprep.mubr.bf16.mxu0 %v492_v20  ;;  %v484_v29 = vmax.f32 %v458_v23, 0.0 }
 0x201   :  { %v460_v26 = vpop.f32.mrf.mxu1  ;;  %951 = vmatmul.mubr.bf16.gmra.mxu0 %v493_v21 }
 0x202   :  { %v461_v27 = vadd.f32 %v777_v43, %v460_v26  ;;  %v487_v28 = vmax.f32 %v469_v24, 0.0 }
 0x204   :  { %v485_v30 = vmax.f32 %v461_v27, 0.0  ;;  %v495_v33 = vpack.c.bf16 %v487_v28, %v486_v31 }
 0x206   :  { %v494_v32 = vpack.c.bf16 %v485_v30, %v484_v29 }
 0x208   :  { %954 = vmatprep.mubr.bf16.mxu0 %v494_v32 }
 0x209   :  { %955 = vmatmul.mubr.bf16.gmra.mxu0 %v495_v33 }
 0x2b1   :  { %v944_v35 = vpop.f32.mrf.mxu0 }
 0x2b2   :  { %v610_v2 = vadd.f32 %v944_v35, %v786_v49 }
 0x2b3   :  { %v601_v36 = vpop.f32.mrf.mxu0 }
 0x2b4   :  { %v602_v5 = vadd.f32 %v786_v49, %v601_v36 }
 0x2b5   :  { %v945_v37 = vpop.f32.mrf.mxu0 }
 0x2b6   :  { %v613_v1 = vadd.f32 %v945_v37, %v786_v49 }
 0x2b7   :  { %v604_v38 = vpop.f32.mrf.mxu0 }
 0x2b8   :  { %v605_v4 = vadd.f32 %v786_v49, %v604_v38 }
 0x2b9   :  { %v948_v39 = vpop.f32.mrf.mxu0 }
 0x2ba   :  { %v626_v61 = vadd.f32 %v948_v39, %v786_v49 }
 0x2bb   :  { %v617_v40 = vpop.f32.mrf.mxu0 }
 0x2bc   :  { %v618_v63 = vadd.f32 %v786_v49, %v617_v40 }
 0x2bd   :  { %v949_v41 = vpop.f32.mrf.mxu0 }
 0x2be   :  { %v629_v60 = vadd.f32 %v949_v41, %v786_v49 }
 0x2bf   :  { %v620_v42 = vpop.f32.mrf.mxu0 }
 0x2c0   :  { %v621_v62 = vadd.f32 %v786_v49, %v620_v42 }
 0x2c1   :  { %v952_v43 = vpop.f32.mrf.mxu0 }
 0x2c2   :  { %v642_v57 = vadd.f32 %v952_v43, %v786_v49 }
 0x2c3   :  { %v633_v44 = vpop.f32.mrf.mxu0 }
 0x2c4   :  { %v634_v59 = vadd.f32 %v786_v49, %v633_v44 }
 0x2c5   :  { %v953_v45 = vpop.f32.mrf.mxu0 }
 0x2c6   :  { %v645_v56 = vadd.f32 %v953_v45, %v786_v49 }
 0x2c7   :  { %v636_v46 = vpop.f32.mrf.mxu0 }
 0x2c8   :  { %v637_v58 = vadd.f32 %v786_v49, %v636_v46 }
 0x2c9   :  { %v956_v47 = vpop.f32.mrf.mxu0 }
 0x2ca   :  { %v658_v53 = vadd.f32 %v956_v47, %v786_v49 }
 0x2cb   :  { %v649_v48 = vpop.f32.mrf.mxu0 }
 0x2cc   :  { %v650_v55 = vadd.f32 %v786_v49, %v649_v48 }
 0x2cd   :  { %v957_v50 = vpop.f32.mrf.mxu0 }
 0x2ce   :  { %v661_v51 = vadd.f32 %v957_v50, %v786_v49 }
 0x2cf   :  { %v652_v52 = vpop.f32.mrf.mxu0 }
 0x2d0   :  { %959 = vmatpush3.msra.mxu1 %v661_v51  ;;  %v653_v54 = vadd.f32 %v786_v49, %v652_v52 }
 0x2d1   :  { %960 = vmatprep.subr.mxu1 %v1145_v34 }
 0x2d2   :  { %961 = vmatpush3.msra.mxu1 %v658_v53 }
 0x2d3   :  { %962 = vmatprep.subr.mxu1 %v1145_v34 }
 0x2d4   :  { %963 = vmatpush3.msra.mxu1 %v653_v54 }
 0x2d5   :  { %964 = vmatprep.subr.mxu1 %v1145_v34 }
 0x2d6   :  { %965 = vmatpush3.msra.mxu1 %v650_v55 }
 0x2d7   :  { %966 = vmatprep.subr.mxu1 %v1145_v34 }
 0x2d8   :  { %967 = vmatpush3.msra.mxu1 %v645_v56 }
 0x2d9   :  { %968 = vmatprep.subr.mxu1 %v1145_v34 }
 0x2da   :  { %969 = vmatpush3.msra.mxu1 %v642_v57 }
 0x2db   :  { %970 = vmatprep.subr.mxu1 %v1145_v34 }
 0x2dc   :  { %971 = vmatpush3.msra.mxu1 %v637_v58 }
 0x2dd   :  { %972 = vmatprep.subr.mxu1 %v1145_v34 }
 0x2de   :  { %973 = vmatpush3.msra.mxu1 %v634_v59 }
 0x2df   :  { %974 = vmatprep.subr.mxu1 %v1145_v34 }
 0x2e0   :  { %975 = vmatpush3.msra.mxu1 %v629_v60 }
 0x2e1   :  { %976 = vmatprep.subr.mxu1 %v1145_v34 }
 0x2e2   :  { %977 = vmatpush3.msra.mxu1 %v626_v61 }
 0x2e3   :  { %978 = vmatprep.subr.mxu1 %v1145_v34 }
 0x2e4   :  { %979 = vmatpush3.msra.mxu1 %v621_v62 }
 0x2e5   :  { %980 = vmatprep.subr.mxu1 %v1145_v34 }
 0x2e6   :  { %981 = vmatpush3.msra.mxu1 %v618_v63 }
 0x2e7   :  { %982 = vmatprep.subr.mxu1 %v1145_v34 }
 0x2e8   :  { %983 = vmatpush3.msra.mxu1 %v613_v1 }
 0x2e9   :  { %984 = vmatprep.subr.mxu1 %v1145_v34 }
 0x2ea   :  { %985 = vmatpush3.msra.mxu1 %v610_v2 }
 0x2eb   :  { %986 = vmatprep.subr.mxu1 %v1145_v34 }
 0x2ec   :  { %987 = vmatpush3.msra.mxu1 %v605_v4 }
 0x2ed   :  { %988 = vmatprep.subr.mxu1 %v1145_v34 }
 0x2ee   :  { %989 = vmatpush3.msra.mxu1 %v602_v5 }
 0x2ef   :  { %991 = vmatmul.mubr.msk.f32.vlgmr.msra.gmra.mxu1 %vm669_vm1, %v1147_v6 }
 0x3af   :  { %v739_v8 = vpop.f32.mrf.mxu1 }
 0x3b0   :  { %v743_v9 = vadd.f32 %v739_v8, %v672_v7 }
 0x3b1   :  { %v992_v10 = vpop.f32.mrf.mxu1 }
 0x3b2   :  { %744 = vst [vmem:[#allocation10] sm:$0x1] %v743_v9 }
 0x3b9   :  { %v748_v11 = vld [vmem:[#allocation10] sm:$0x1] }
 0x3ba   :  { %v749_v12 = vmul.f32 0.125, %v748_v11 }
 0x3bc   :  { %750 = vst [vmem:[#allocation10] sm:$0x1] %v749_v12 }
 0x3bd   :  { %1120 = shalt.err (!%p1117_p10)
}
 0x3be   :  { %760 = dma.vmem_to_hbm [thread:$0]  %s758_s25, 16, %s1247_s7, [#allocation4]  }
 0x3bf   :  { %1135 = dma.done.wait [#allocation4], 16  }
 0x3c0   :  { %1136 = vsyncadd [#allocation4], 4294967280 }
 0x3c1   :  { %764 = vsyncpa [#allocation3], 1 }
 0x3c2   :  { %765 = vsyncpa [#allocation6], 1 }
 0x3c3   :  { %766 = vsyncpa [#allocation9], 1 }
 0x3c4   :  { %767 = vsyncpa [#allocation4], 1 }

</bundles_post_ra>
